<compile_context>
chip_gen: v6e
topology: v6e:2x2x1
jax: 0.10.0
libtpu: 0.0.40
codegen_flags: <defaults>
</compile_context>

<pallas_src>
import functools
import numpy as np

import jax
import jax.numpy as jnp
from jax.experimental import pallas as pl
from jax.experimental.pallas import tpu as pltpu


def _round_up(x, m):
    return ((x + m - 1) // m) * m


def _default_batch_tile():
    # v6e/v7x MXU is 256-wide -> M=256 tiles; v5e MXU is 4x128x128 -> 128 suffices.
    try:
        kind = jax.devices()[0].device_kind.lower()
        if "v5" in kind:
            return 128
    except Exception:
        pass
    return 256


def _vmem_cap_bytes():
    try:
        return int(pltpu.get_tpu_info().vmem_capacity_bytes)
    except Exception:
        return 64 << 20  # v7x per-TC capacity (smallest of the three generations)


def _vc_kernel(labels_ref, x_ref, rhs_ref, icov_ref, cconst_ref, b1_ref,
               logits_ref, contrib_ref, *, l1, l2, mm_dtype, quad_dtype):
    x = x_ref[...]                         # [TB, Dp] f32
    labels = labels_ref[...]               # [TB, 1]  int32
    TB = x.shape[0]
    Cp = icov_ref.shape[1]                 # padded class count (multiple of 128)

    # ---- MXU: cross term + discriminator in one matmul, quadratic in another.
    # m1[:, :Cp] = x @ (mu*inv_cov).T   (Mahalanobis cross term)
    # m1[:, Cp:] = x @ W1.T             (Discriminators_1l)
    m1 = jnp.dot(x.astype(mm_dtype), rhs_ref[...],
                 preferred_element_type=jnp.float32)                     # [TB, 2Cp]
    qx = jnp.dot((x * x).astype(quad_dtype), icov_ref[...],
                 preferred_element_type=jnp.float32)                     # [TB, Cp]
    cross = m1[:, :Cp]
    xw1 = m1[:, Cp:]

    # cconst = sum(log_covs) + sum(mu^2*inv_cov) on real columns, +2e30 on padded
    # columns -> padded logits ~= -1e30 with no separate mask/select pass.
    logits = -0.5 * (qx - 2.0 * cross + cconst_ref[...])                 # [TB, Cp] f32
    logits_ref[...] = logits.astype(logits_ref.dtype)

    # ---- f32 log-sum-exp (padded columns underflow to exp(.) = 0).
    m = jnp.max(logits, axis=-1, keepdims=True)
    lse = m + jnp.log(jnp.sum(jnp.exp(logits - m), axis=-1, keepdims=True))

    # ---- single fused one-hot reduction:
    #   contrib = lse - (1+l1)*logits[y] + l2*(x.W1[y] + b1[y])
    col_ids = jax.lax.broadcasted_iota(jnp.int32, (TB, Cp), 1)
    onehot = (col_ids == labels).astype(jnp.float32)                     # [TB, Cp]
    gathered = jnp.sum(
        onehot * (l2 * (xw1 + b1_ref[...]) - (1.0 + l1) * logits),
        axis=-1, keepdims=True)                                          # [TB, 1]
    contrib = lse + gathered

    # Lane-dense (TB,128) store: unmasked vst; wrapper reads column 0.
    contrib_ref[...] = jnp.broadcast_to(contrib, contrib_ref.shape)


def variational_classification_forward(outputs, targets, params, *, l1, l2,
                                        mm_dtype=jnp.bfloat16,
                                        quad_dtype=jnp.float32,
                                        logits_dtype=jnp.float32,
                                        batch_tile=None):
    """Returns (loss, logits) like VariationalClassification.forward (disc_layers=1)."""
    B, D = outputs.shape
    C = params["centers"].shape[0]

    Cp = _round_up(C, 128)                       # lane-dense class dim
    Dp = _round_up(D, 128)                       # lane-dense feature dim
    if batch_tile is None:
        batch_tile = _default_batch_tile()
    TB = min(batch_tile, _round_up(B, 8))
    # v7x megacore: keep >= 2 steps on the "parallel" batch axis when possible
    # (shrink the tile rather than running a 1-step grid that idles one TC).
    if TB > 8 and _round_up(B, TB) // TB < 2:
        TB = _round_up((B + 1) // 2, 8)
    B_pad = _round_up(B, TB)

    f32 = jnp.float32
    centers = params["centers"].astype(f32)
    log_covs = params["log_covs"].astype(f32)
    W1 = params["W1"].astype(f32)
    b1 = params["b1"].astype(f32)

    # Batch-independent class-side precompute (hoisted out of the kernel).
    inv_cov = jnp.exp(-log_covs)                 # [C, D]
    scaled_mu = centers * inv_cov                # [C, D]
    cconst = jnp.sum(log_covs, -1) + jnp.sum(centers * scaled_mu, -1)    # [C]

    def pad2(a, r, c):
        return jnp.pad(a, ((0, r - a.shape[0]), (0, c - a.shape[1])))

    # Stacked, pre-transposed RHS: cols [0:Cp] -> mu*inv_cov, [Cp:2Cp] -> W1.
    rhs_T = jnp.concatenate([pad2(scaled_mu, Cp, Dp),
                             pad2(W1, Cp, Dp)], axis=0).T.astype(mm_dtype)   # [Dp, 2Cp]
    icov_T = pad2(inv_cov, Cp, Dp).T.astype(quad_dtype)                      # [Dp, Cp]
    # +2e30 on padded class columns -> their logits become ~ -1e30 in-kernel.
    cconst_p = jnp.pad(cconst, (0, Cp - C), constant_values=2e30).reshape(1, Cp)
    b1_p = jnp.pad(b1, (0, Cp - C)).reshape(1, Cp)

    x_p = pad2(outputs.astype(f32), B_pad, Dp)                               # [B_pad, Dp]
    labels_p = jnp.pad(targets.astype(jnp.int32), (0, B_pad - B)).reshape(B_pad, 1)

    kernel = functools.partial(_vc_kernel, l1=float(l1), l2=float(l2),
                               mm_dtype=mm_dtype, quad_dtype=quad_dtype)

    # ---- explicit VMEM budget (v7x: 64 MiB total, 32 MiB scoped default) ----
    mm_b = jnp.dtype(mm_dtype).itemsize
    qd_b = jnp.dtype(quad_dtype).itemsize
    lg_b = jnp.dtype(logits_dtype).itemsize
    resident = 2 * Cp * Dp * mm_b + Cp * Dp * qd_b + 2 * Cp * 4              # 1 buffer each
    streamed = 2 * (TB * 4 + TB * Dp * 4 + TB * Cp * lg_b + TB * 128 * 4)    # double-buffered
    intermediates = 8 * TB * Cp * 4                                          # m1/qx/logits/onehot/...
    budget = int(1.5 * (resident + streamed + intermediates))
    vmem_limit = int(min(max(budget, 32 << 20), _vmem_cap_bytes()))
    # TODO(synk): for very large C (resident class params approaching ~1/3 of VMEM),
    # add a class-dimension grid axis with an online log-sum-exp accumulator instead
    # of keeping rhs_T/icov_T/cconst/b1/logits fully resident.

    def build(single_buffer):
        def const_spec(shape):
            if single_buffer:
                # Revisited every grid step -> double-buffering buys nothing; halve VMEM.
                return pl.BlockSpec(shape, lambda i: (0, 0),
                                    pipeline_mode=pl.Buffered(1))
            return pl.BlockSpec(shape, lambda i: (0, 0))

        return pl.pallas_call(
            kernel,
            out_shape=(jax.ShapeDtypeStruct((B_pad, Cp), logits_dtype),
                       jax.ShapeDtypeStruct((B_pad, 128), jnp.float32)),
            grid=(B_pad // TB,),
            in_specs=[
                pl.BlockSpec((TB, 1), lambda i: (i, 0)),        # labels
                pl.BlockSpec((TB, Dp), lambda i: (i, 0)),       # features
                const_spec((Dp, 2 * Cp)),                       # [mu*inv_cov ; W1]^T (resident)
                const_spec((Dp, Cp)),                           # inv_cov^T (resident)
                const_spec((1, Cp)),                            # sum(log_covs)+sum(mu^2*inv_cov)
                const_spec((1, Cp)),                            # b1
            ],
            out_specs=(
                pl.BlockSpec((TB, Cp), lambda i: (i, 0)),       # logits (lane-dense)
                pl.BlockSpec((TB, 128), lambda i: (i, 0)),      # per-row loss contribution
            ),
            compiler_params=pltpu.CompilerParams(
                dimension_semantics=("parallel",),              # batch axis -> megacore
                vmem_limit_bytes=vmem_limit),
        )

    args = (labels_p, x_p, rhs_T, icov_T, cconst_p, b1_p)
    try:
        logits_p, contrib = build(single_buffer=True)(*args)
    except Exception:
        # Older JAX may reject pl.Buffered(1); fall back to default buffering.
        logits_p, contrib = build(single_buffer=False)(*args)

    loss = jnp.sum(contrib[:B, 0]) / B          # mean(ce) + l1*mean(lik) + l2*mean(Treal)
    logits = logits_p[:B, :C]
    return loss, logits


def _reference_forward(outputs, targets, params, *, l1, l2):
    # Pure-JAX mirror of the PyTorch forward (disc_layers=1), for validation.
    centers, log_covs = params["centers"], params["log_covs"]
    W1, b1 = params["W1"], params["b1"]
    covs = jnp.exp(log_covs)[None]
    diff = outputs[:, None, :] - centers[None]
    wdiff = diff / covs
    dist = jnp.sum(diff * wdiff, -1)
    slog = jnp.sum(log_covs, -1)[None]
    logits = -0.5 * (slog + dist)
    B = outputs.shape[0]
    picked = logits[jnp.arange(B), targets]
    likelihood = -picked
    ce = jnp.mean(jax.nn.logsumexp(logits, axis=-1) - picked)
    treal = jnp.sum(W1[targets] * outputs, -1) + b1[targets]
    loss = ce + l1 * jnp.mean(likelihood) + l2 * jnp.mean(treal)
    return loss, logits


if __name__ == "__main__":
    # args: disc_layers=1 (Discriminators_1l path), l1/l2 loss weights.
    L1, L2 = 0.1, 0.5
    B, C, D = 8, 16, 32  # batch, num_classes, feat_dim

    key = jax.random.PRNGKey(0)
    k_feat, k_tgt, k_cent, k_w1, k_samp = jax.random.split(key, 5)

    outputs = jax.random.normal(k_feat, (B, D), dtype=jnp.float32)
    targets = jax.random.randint(k_tgt, (B,), 0, C, dtype=jnp.int32)

    params = {
        # AdversarialContrastiveLoss params
        "centers": jax.random.normal(k_cent, (C, D), dtype=jnp.float32),
        "log_covs": jnp.zeros((C, D), dtype=jnp.float32),
        # Discriminators_1l params
        "W1": jax.random.normal(k_w1, (C, D), dtype=jnp.float32),
        "b1": jnp.zeros((C,), dtype=jnp.float32),
    }

    ref_loss, ref_logits = _reference_forward(outputs, targets, params, l1=L1, l2=L2)

    # Default path: bf16 MXU operands for the cross/W1 matmul (looser tolerance).
    loss, logits = variational_classification_forward(outputs, targets, params,
                                                      l1=L1, l2=L2)
    jax.block_until_ready((loss, logits))
    assert np.allclose(np.asarray(logits), np.asarray(ref_logits), rtol=2e-2, atol=2e-1)
    assert np.allclose(np.asarray(loss), np.asarray(ref_loss), rtol=2e-2, atol=2e-1)

    # Full-f32 path: tight tolerance check of the kernel math.
    loss32, logits32 = variational_classification_forward(
        outputs, targets, params, l1=L1, l2=L2,
        mm_dtype=jnp.float32, quad_dtype=jnp.float32)
    jax.block_until_ready((loss32, logits32))
    assert np.allclose(np.asarray(logits32), np.asarray(ref_logits), rtol=1e-4, atol=1e-3)
    assert np.allclose(np.asarray(loss32), np.asarray(ref_loss), rtol=1e-4, atol=1e-3)

    # Side state self.sampled (detached, not returned by forward) -- plain-JAX glue.
    sampled = (jax.random.normal(k_samp, (B, D), dtype=jnp.float32)
               * jnp.sqrt(jnp.exp(params["log_covs"][targets]))
               + params["centers"][targets])
    jax.block_until_ready(sampled)

    print("KERNEL_OK")
</pallas_src>

<mosaic_0001>
module attributes {stable_mosaic.version = 11 : i64} {
  func.func @_vc_kernel(%arg0: i32, %arg1: memref<8x1xi32, #tpu.memory_space<vmem>>, %arg2: memref<8x128xf32, #tpu.memory_space<vmem>>, %arg3: memref<128x256xbf16, #tpu.memory_space<vmem>>, %arg4: memref<128x128xf32, #tpu.memory_space<vmem>>, %arg5: memref<1x128xf32, #tpu.memory_space<vmem>>, %arg6: memref<1x128xf32, #tpu.memory_space<vmem>>, %arg7: memref<8x128xf32, #tpu.memory_space<vmem>>, %arg8: memref<8x128xf32, #tpu.memory_space<vmem>>) attributes {dimension_semantics = [#tpu.dimension_semantics<parallel>], iteration_bounds = array<i64: 1>, scalar_prefetch = 0 : i64, scratch_operands = 0 : i64, tpu.core_type = #tpu.core_type<tc>, window_params = [{transform_indices = @transform_0, window_bounds = array<i64: 8, 1>}, {transform_indices = @transform_1, window_bounds = array<i64: 8, 128>}, {pipeline_mode = #tpu.pipeline_mode<synchronous>, transform_indices = @transform_2, window_bounds = array<i64: 128, 256>}, {pipeline_mode = #tpu.pipeline_mode<synchronous>, transform_indices = @transform_3, window_bounds = array<i64: 128, 128>}, {pipeline_mode = #tpu.pipeline_mode<synchronous>, transform_indices = @transform_4, window_bounds = array<i64: 1, 128>}, {pipeline_mode = #tpu.pipeline_mode<synchronous>, transform_indices = @transform_5, window_bounds = array<i64: 1, 128>}, {transform_indices = @transform_6, window_bounds = array<i64: 8, 128>}, {transform_indices = @transform_7, window_bounds = array<i64: 8, 128>}]} {
    %c0 = arith.constant 0 : index
    %c0_0 = arith.constant 0 : index
    %0 = vector.load %arg2[%c0, %c0_0] : memref<8x128xf32, #tpu.memory_space<vmem>>, vector<8x128xf32>
    %c0_1 = arith.constant 0 : index
    %c0_2 = arith.constant 0 : index
    %1 = vector.load %arg1[%c0_1, %c0_2] : memref<8x1xi32, #tpu.memory_space<vmem>>, vector<8x1xi32>
    %2 = arith.truncf %0 : vector<8x128xf32> to vector<8x128xbf16>
    %c0_3 = arith.constant 0 : index
    %c0_4 = arith.constant 0 : index
    %3 = vector.load %arg3[%c0_3, %c0_4] : memref<128x256xbf16, #tpu.memory_space<vmem>>, vector<128x256xbf16>
    %cst = arith.constant dense<0.000000e+00> : vector<8x256xf32>
    %4 = tpu.matmul %2, %3, %cst {dimension_numbers = #tpu.dot_dimension_numbers<[1], [0], [0], [1], [0, 0, 1, 1], [], []>} : vector<8x128xbf16>, vector<128x256xbf16>, vector<8x256xf32> -> vector<8x256xf32>
    %5 = arith.mulf %0, %0 : vector<8x128xf32>
    %c0_5 = arith.constant 0 : index
    %c0_6 = arith.constant 0 : index
    %6 = vector.load %arg4[%c0_5, %c0_6] : memref<128x128xf32, #tpu.memory_space<vmem>>, vector<128x128xf32>
    %cst_7 = arith.constant dense<0.000000e+00> : vector<8x128xf32>
    %7 = tpu.matmul %5, %6, %cst_7 {dimension_numbers = #tpu.dot_dimension_numbers<[1], [0], [0], [1], [0, 0, 1, 1], [], []>} : vector<8x128xf32>, vector<128x128xf32>, vector<8x128xf32> -> vector<8x128xf32>
    %8 = vector.extract_strided_slice %4 {offsets = [0, 0], sizes = [8, 128], strides = [1, 1]} : vector<8x256xf32> to vector<8x128xf32>
    %9 = vector.extract_strided_slice %4 {offsets = [0, 128], sizes = [8, 128], strides = [1, 1]} : vector<8x256xf32> to vector<8x128xf32>
    %cst_8 = arith.constant 2.000000e+00 : f32
    %10 = vector.broadcast %cst_8 : f32 to vector<8x128xf32>
    %11 = arith.mulf %10, %8 : vector<8x128xf32>
    %12 = arith.subf %7, %11 : vector<8x128xf32>
    %c0_9 = arith.constant 0 : index
    %c0_10 = arith.constant 0 : index
    %13 = vector.load %arg5[%c0_9, %c0_10] : memref<1x128xf32, #tpu.memory_space<vmem>>, vector<1x128xf32>
    %14 = vector.broadcast %13 : vector<1x128xf32> to vector<8x128xf32>
    %15 = arith.addf %12, %14 : vector<8x128xf32>
    %cst_11 = arith.constant -5.000000e-01 : f32
    %16 = vector.broadcast %cst_11 : f32 to vector<8x128xf32>
    %17 = arith.mulf %16, %15 : vector<8x128xf32>
    %c0_12 = arith.constant 0 : index
    %c0_13 = arith.constant 0 : index
    %18 = vector.load %arg7[%c0_12, %c0_13] : memref<8x128xf32, #tpu.memory_space<vmem>>, vector<8x128xf32>
    tpu.vector_store %arg7[%c0_12, %c0_13], %17 {strides = array<i32>} : memref<8x128xf32, #tpu.memory_space<vmem>>, vector<8x128xf32>,
    %cst_14 = arith.constant dense<0xFF800000> : vector<8xf32>
    %19 = vector.multi_reduction <maximumf>, %17, %cst_14 [1] : vector<8x128xf32> to vector<8xf32>
    %20 = vector.shape_cast %19 : vector<8xf32> to vector<8x1xf32>
    %21 = vector.broadcast %20 : vector<8x1xf32> to vector<8x128xf32>
    %22 = arith.subf %17, %21 : vector<8x128xf32>
    %23 = math.exp %22 : vector<8x128xf32>
    %cst_15 = arith.constant dense<0.000000e+00> : vector<8xf32>
    %24 = vector.multi_reduction <add>, %23, %cst_15 [1] : vector<8x128xf32> to vector<8xf32>
    %25 = vector.shape_cast %24 : vector<8xf32> to vector<8x1xf32>
    %26 = math.log %25 : vector<8x1xf32>
    %27 = arith.addf %20, %26 : vector<8x1xf32>
    %28 = tpu.iota {dimensions = array<i32: 1>} : vector<8x128xi32>
    %29 = vector.broadcast %1 : vector<8x1xi32> to vector<8x128xi32>
    %30 = arith.cmpi eq, %28, %29 : vector<8x128xi32>
    %31 = arith.extui %30 : vector<8x128xi1> to vector<8x128xi32>
    %32 = arith.sitofp %31 : vector<8x128xi32> to vector<8x128xf32>
    %c0_16 = arith.constant 0 : index
    %c0_17 = arith.constant 0 : index
    %33 = vector.load %arg6[%c0_16, %c0_17] : memref<1x128xf32, #tpu.memory_space<vmem>>, vector<1x128xf32>
    %34 = vector.broadcast %33 : vector<1x128xf32> to vector<8x128xf32>
    %35 = arith.addf %9, %34 : vector<8x128xf32>
    %cst_18 = arith.constant 5.000000e-01 : f32
    %36 = vector.broadcast %cst_18 : f32 to vector<8x128xf32>
    %37 = arith.mulf %36, %35 : vector<8x128xf32>
    %cst_19 = arith.constant 1.100000e+00 : f32
    %38 = vector.broadcast %cst_19 : f32 to vector<8x128xf32>
    %39 = arith.mulf %38, %17 : vector<8x128xf32>
    %40 = arith.subf %37, %39 : vector<8x128xf32>
    %41 = arith.mulf %32, %40 : vector<8x128xf32>
    %cst_20 = arith.constant dense<0.000000e+00> : vector<8xf32>
    %42 = vector.multi_reduction <add>, %41, %cst_20 [1] : vector<8x128xf32> to vector<8xf32>
    %43 = vector.shape_cast %42 : vector<8xf32> to vector<8x1xf32>
    %44 = arith.addf %27, %43 : vector<8x1xf32>
    %45 = vector.shape_cast %44 : vector<8x1xf32> to vector<8x1xf32>
    %46 = vector.broadcast %45 : vector<8x1xf32> to vector<8x128xf32>
    %c0_21 = arith.constant 0 : index
    %c0_22 = arith.constant 0 : index
    %47 = vector.load %arg8[%c0_21, %c0_22] : memref<8x128xf32, #tpu.memory_space<vmem>>, vector<8x128xf32>
    tpu.vector_store %arg8[%c0_21, %c0_22], %46 {strides = array<i32>} : memref<8x128xf32, #tpu.memory_space<vmem>>, vector<8x128xf32>,
    return
  }
  func.func @transform_0(%arg0: i32) -> (i32, i32) {
    %c0_i32 = arith.constant 0 : i32
    %c0_i32_0 = arith.constant 0 : i32
    return %arg0, %c0_i32 : i32, i32
  }
  func.func @transform_1(%arg0: i32) -> (i32, i32) {
    %c0_i32 = arith.constant 0 : i32
    %c0_i32_0 = arith.constant 0 : i32
    return %arg0, %c0_i32 : i32, i32
  }
  func.func @transform_2(%arg0: i32) -> (i32, i32) {
    %c0_i32 = arith.constant 0 : i32
    %c0_i32_0 = arith.constant 0 : i32
    %c0_i32_1 = arith.constant 0 : i32
    return %c0_i32, %c0_i32_0 : i32, i32
  }
  func.func @transform_3(%arg0: i32) -> (i32, i32) {
    %c0_i32 = arith.constant 0 : i32
    %c0_i32_0 = arith.constant 0 : i32
    %c0_i32_1 = arith.constant 0 : i32
    return %c0_i32, %c0_i32_0 : i32, i32
  }
  func.func @transform_4(%arg0: i32) -> (i32, i32) {
    %c0_i32 = arith.constant 0 : i32
    %c0_i32_0 = arith.constant 0 : i32
    %c0_i32_1 = arith.constant 0 : i32
    return %c0_i32, %c0_i32_0 : i32, i32
  }
  func.func @transform_5(%arg0: i32) -> (i32, i32) {
    %c0_i32 = arith.constant 0 : i32
    %c0_i32_0 = arith.constant 0 : i32
    %c0_i32_1 = arith.constant 0 : i32
    return %c0_i32, %c0_i32_0 : i32, i32
  }
  func.func @transform_6(%arg0: i32) -> (i32, i32) {
    %c0_i32 = arith.constant 0 : i32
    %c0_i32_0 = arith.constant 0 : i32
    return %arg0, %c0_i32 : i32, i32
  }
  func.func @transform_7(%arg0: i32) -> (i32, i32) {
    %c0_i32 = arith.constant 0 : i32
    %c0_i32_0 = arith.constant 0 : i32
    return %arg0, %c0_i32 : i32, i32
  }
}

module attributes {stable_mosaic.version = 11 : i64} {
  func.func @_vc_kernel(%arg0: i32, %arg1: memref<8x1xi32, #tpu.memory_space<vmem>>, %arg2: memref<8x128xf32, #tpu.memory_space<vmem>>, %arg3: memref<128x256xbf16, #tpu.memory_space<vmem>>, %arg4: memref<128x128xf32, #tpu.memory_space<vmem>>, %arg5: memref<1x128xf32, #tpu.memory_space<vmem>>, %arg6: memref<1x128xf32, #tpu.memory_space<vmem>>, %arg7: memref<8x128xf32, #tpu.memory_space<vmem>>, %arg8: memref<8x128xf32, #tpu.memory_space<vmem>>) attributes {dimension_semantics = [#tpu.dimension_semantics<parallel>], iteration_bounds = array<i64: 1>, scalar_prefetch = 0 : i64, scratch_operands = 0 : i64, tpu.core_type = #tpu.core_type<tc>, window_params = [{transform_indices = @transform_0, window_bounds = array<i64: 8, 1>}, {transform_indices = @transform_1, window_bounds = array<i64: 8, 128>}, {pipeline_mode = #tpu.pipeline_mode<synchronous>, transform_indices = @transform_2, window_bounds = array<i64: 128, 256>}, {pipeline_mode = #tpu.pipeline_mode<synchronous>, transform_indices = @transform_3, window_bounds = array<i64: 128, 128>}, {pipeline_mode = #tpu.pipeline_mode<synchronous>, transform_indices = @transform_4, window_bounds = array<i64: 1, 128>}, {pipeline_mode = #tpu.pipeline_mode<synchronous>, transform_indices = @transform_5, window_bounds = array<i64: 1, 128>}, {transform_indices = @transform_6, window_bounds = array<i64: 8, 128>}, {transform_indices = @transform_7, window_bounds = array<i64: 8, 128>}]} {
    %c0 = arith.constant 0 : index
    %c0_0 = arith.constant 0 : index
    %0 = vector.load %arg2[%c0, %c0_0] : memref<8x128xf32, #tpu.memory_space<vmem>>, vector<8x128xf32>
    %c0_1 = arith.constant 0 : index
    %c0_2 = arith.constant 0 : index
    %1 = vector.load %arg1[%c0_1, %c0_2] : memref<8x1xi32, #tpu.memory_space<vmem>>, vector<8x1xi32>
    %2 = arith.truncf %0 : vector<8x128xf32> to vector<8x128xbf16>
    %c0_3 = arith.constant 0 : index
    %c0_4 = arith.constant 0 : index
    %3 = vector.load %arg3[%c0_3, %c0_4] : memref<128x256xbf16, #tpu.memory_space<vmem>>, vector<128x256xbf16>
    %cst = arith.constant dense<0.000000e+00> : vector<8x256xf32>
    %4 = tpu.matmul %2, %3, %cst {dimension_numbers = #tpu.dot_dimension_numbers<[1], [0], [0], [1], [0, 0, 1, 1], [], []>} : vector<8x128xbf16>, vector<128x256xbf16>, vector<8x256xf32> -> vector<8x256xf32>
    %5 = arith.mulf %0, %0 : vector<8x128xf32>
    %c0_5 = arith.constant 0 : index
    %c0_6 = arith.constant 0 : index
    %6 = vector.load %arg4[%c0_5, %c0_6] : memref<128x128xf32, #tpu.memory_space<vmem>>, vector<128x128xf32>
    %cst_7 = arith.constant dense<0.000000e+00> : vector<8x128xf32>
    %7 = tpu.matmul %5, %6, %cst_7 {dimension_numbers = #tpu.dot_dimension_numbers<[1], [0], [0], [1], [0, 0, 1, 1], [], []>} : vector<8x128xf32>, vector<128x128xf32>, vector<8x128xf32> -> vector<8x128xf32>
    %8 = vector.extract_strided_slice %4 {offsets = [0, 0], sizes = [8, 128], strides = [1, 1]} : vector<8x256xf32> to vector<8x128xf32>
    %9 = vector.extract_strided_slice %4 {offsets = [0, 128], sizes = [8, 128], strides = [1, 1]} : vector<8x256xf32> to vector<8x128xf32>
    %cst_8 = arith.constant 2.000000e+00 : f32
    %10 = vector.broadcast %cst_8 : f32 to vector<8x128xf32>
    %11 = arith.mulf %10, %8 : vector<8x128xf32>
    %12 = arith.subf %7, %11 : vector<8x128xf32>
    %c0_9 = arith.constant 0 : index
    %c0_10 = arith.constant 0 : index
    %13 = vector.load %arg5[%c0_9, %c0_10] : memref<1x128xf32, #tpu.memory_space<vmem>>, vector<1x128xf32>
    %14 = vector.broadcast %13 : vector<1x128xf32> to vector<8x128xf32>
    %15 = arith.addf %12, %14 : vector<8x128xf32>
    %cst_11 = arith.constant -5.000000e-01 : f32
    %16 = vector.broadcast %cst_11 : f32 to vector<8x128xf32>
    %17 = arith.mulf %16, %15 : vector<8x128xf32>
    %c0_12 = arith.constant 0 : index
    %c0_13 = arith.constant 0 : index
    %18 = vector.load %arg7[%c0_12, %c0_13] : memref<8x128xf32, #tpu.memory_space<vmem>>, vector<8x128xf32>
    tpu.vector_store %arg7[%c0_12, %c0_13], %17 {strides = array<i32>} : memref<8x128xf32, #tpu.memory_space<vmem>>, vector<8x128xf32>,
    %cst_14 = arith.constant dense<0xFF800000> : vector<8xf32>
    %19 = vector.multi_reduction <maximumf>, %17, %cst_14 [1] : vector<8x128xf32> to vector<8xf32>
    %20 = vector.shape_cast %19 : vector<8xf32> to vector<8x1xf32>
    %21 = vector.broadcast %20 : vector<8x1xf32> to vector<8x128xf32>
    %22 = arith.subf %17, %21 : vector<8x128xf32>
    %23 = math.exp %22 : vector<8x128xf32>
    %cst_15 = arith.constant dense<0.000000e+00> : vector<8xf32>
    %24 = vector.multi_reduction <add>, %23, %cst_15 [1] : vector<8x128xf32> to vector<8xf32>
    %25 = vector.shape_cast %24 : vector<8xf32> to vector<8x1xf32>
    %26 = math.log %25 : vector<8x1xf32>
    %27 = arith.addf %20, %26 : vector<8x1xf32>
    %28 = tpu.iota {dimensions = array<i32: 1>} : vector<8x128xi32>
    %29 = vector.broadcast %1 : vector<8x1xi32> to vector<8x128xi32>
    %30 = arith.cmpi eq, %28, %29 : vector<8x128xi32>
    %31 = arith.extui %30 : vector<8x128xi1> to vector<8x128xi32>
    %32 = arith.sitofp %31 : vector<8x128xi32> to vector<8x128xf32>
    %c0_16 = arith.constant 0 : index
    %c0_17 = arith.constant 0 : index
    %33 = vector.load %arg6[%c0_16, %c0_17] : memref<1x128xf32, #tpu.memory_space<vmem>>, vector<1x128xf32>
    %34 = vector.broadcast %33 : vector<1x128xf32> to vector<8x128xf32>
    %35 = arith.addf %9, %34 : vector<8x128xf32>
    %cst_18 = arith.constant 5.000000e-01 : f32
    %36 = vector.broadcast %cst_18 : f32 to vector<8x128xf32>
    %37 = arith.mulf %36, %35 : vector<8x128xf32>
    %cst_19 = arith.constant 1.100000e+00 : f32
    %38 = vector.broadcast %cst_19 : f32 to vector<8x128xf32>
    %39 = arith.mulf %38, %17 : vector<8x128xf32>
    %40 = arith.subf %37, %39 : vector<8x128xf32>
    %41 = arith.mulf %32, %40 : vector<8x128xf32>
    %cst_20 = arith.constant dense<0.000000e+00> : vector<8xf32>
    %42 = vector.multi_reduction <add>, %41, %cst_20 [1] : vector<8x128xf32> to vector<8xf32>
    %43 = vector.shape_cast %42 : vector<8xf32> to vector<8x1xf32>
    %44 = arith.addf %27, %43 : vector<8x1xf32>
    %45 = vector.shape_cast %44 : vector<8x1xf32> to vector<8x1xf32>
    %46 = vector.broadcast %45 : vector<8x1xf32> to vector<8x128xf32>
    %c0_21 = arith.constant 0 : index
    %c0_22 = arith.constant 0 : index
    %47 = vector.load %arg8[%c0_21, %c0_22] : memref<8x128xf32, #tpu.memory_space<vmem>>, vector<8x128xf32>
    tpu.vector_store %arg8[%c0_21, %c0_22], %46 {strides = array<i32>} : memref<8x128xf32, #tpu.memory_space<vmem>>, vector<8x128xf32>,
    return
  }
  func.func @transform_0(%arg0: i32) -> (i32, i32) {
    %c0_i32 = arith.constant 0 : i32
    %c0_i32_0 = arith.constant 0 : i32
    return %arg0, %c0_i32 : i32, i32
  }
  func.func @transform_1(%arg0: i32) -> (i32, i32) {
    %c0_i32 = arith.constant 0 : i32
    %c0_i32_0 = arith.constant 0 : i32
    return %arg0, %c0_i32 : i32, i32
  }
  func.func @transform_2(%arg0: i32) -> (i32, i32) {
    %c0_i32 = arith.constant 0 : i32
    %c0_i32_0 = arith.constant 0 : i32
    %c0_i32_1 = arith.constant 0 : i32
    return %c0_i32, %c0_i32_0 : i32, i32
  }
  func.func @transform_3(%arg0: i32) -> (i32, i32) {
    %c0_i32 = arith.constant 0 : i32
    %c0_i32_0 = arith.constant 0 : i32
    %c0_i32_1 = arith.constant 0 : i32
    return %c0_i32, %c0_i32_0 : i32, i32
  }
  func.func @transform_4(%arg0: i32) -> (i32, i32) {
    %c0_i32 = arith.constant 0 : i32
    %c0_i32_0 = arith.constant 0 : i32
    %c0_i32_1 = arith.constant 0 : i32
    return %c0_i32, %c0_i32_0 : i32, i32
  }
  func.func @transform_5(%arg0: i32) -> (i32, i32) {
    %c0_i32 = arith.constant 0 : i32
    %c0_i32_0 = arith.constant 0 : i32
    %c0_i32_1 = arith.constant 0 : i32
    return %c0_i32, %c0_i32_0 : i32, i32
  }
  func.func @transform_6(%arg0: i32) -> (i32, i32) {
    %c0_i32 = arith.constant 0 : i32
    %c0_i32_0 = arith.constant 0 : i32
    return %arg0, %c0_i32 : i32, i32
  }
  func.func @transform_7(%arg0: i32) -> (i32, i32) {
    %c0_i32 = arith.constant 0 : i32
    %c0_i32_0 = arith.constant 0 : i32
    return %arg0, %c0_i32 : i32, i32
  }
}

</mosaic_0001>

<bundles_post_ra>
// kernel: tpu_custom_call.1
= control target key start
LH: loop header
LB: loop body
LE: loop exit
PB: predicated region body
PF: predicated region fallthrough
CT: control target
= control target key end

     0   :  { %13 = vsyncpa [#allocation3], 0  ;;  %s647_s0 = inlined_call_operand.vmem [shape: s32[8,1], index: 0, kind: input, shape index: {}]   ;;  %s648_s1 = inlined_call_operand.vmem [shape: f32[8,128], index: 1, kind: input, shape index: {}]   ;;  %s649_s2 = inlined_call_operand.hbm [shape: bf16[128,256], index: 2, kind: input, shape index: {}]   ;;  %s650_s3 = inlined_call_operand.hbm [shape: f32[128,128], index: 3, kind: input, shape index: {}]   ;;  %s651_s4 = inlined_call_operand.vmem [shape: f32[1,128], index: 4, kind: input, shape index: {}]   ;;  %s652_s5 = inlined_call_operand.vmem [shape: f32[1,128], index: 5, kind: input, shape index: {}]   ;;  %s653_s6 = inlined_call_operand.hbm [shape: f32[8,128], index: 6, kind: output, shape index: {0}]   ;;  %s654_s7 = inlined_call_operand.hbm [shape: f32[8,128], index: 7, kind: output, shape index: {1}]  }
   0x1   :  { %14 = vsyncpa [#allocation6], 0 }
   0x2   :  { %15 = vsyncpa [#allocation4], 0 }
   0x3   :  { %16 = vsyncpa [#allocation9], 0  ;;  %s556_s24 = smov [#allocation2]  }
   0x4   :  { %s26_s25 = sshll.u32 %s556_s24, 4  ;;  %s27_s25 = int_to_ptr.vmem [resolvable:$true] %s26_s25 }
   0x5   :  { %s476_s26 = scalar_lea.vmem %s27_s25, 2048  ;;  %p481_p1 = scmp.lt.s32.totalorder %s27_s25, %s27_s25 }
   0x6   :  { %p477_p0 = scmp.ne.s32.totalorder %s27_s25, %s476_s26  ;;  %p482_p2 = scmp.lt.s32.totalorder %s476_s26, %s476_s26 }
   0x8   :  { %p483_p3 = por %p482_p2, %p481_p1 }
   0xa   :  { %p484_p4 = pnand %p483_p3, %p477_p0 }
   0xc   :  { %487 = shalt.err (!%p484_p4)
}
   0xd   :  { %s557_s27 = smov 128   ;;  %s558_s28 = smov 8  }
   0xe   :  { %32 = dma.hbm_to_vmem [thread:$0]  %s649_s2, 2048, %s27_s25, [#allocation3], %s557_s27, %s557_s27, %s558_s28  }
   0xf   :  { %s559_s8 = smov [#allocation5]  }
  0x10   :  { %s38_s9 = sshll.u32 %s559_s8, 4  ;;  %s39_s9 = int_to_ptr.vmem [resolvable:$true] %s38_s9 }
  0x11   :  { %s496_s10 = scalar_lea.vmem %s39_s9, 2048  ;;  %p501_p6 = scmp.lt.s32.totalorder %s39_s9, %s39_s9 }
  0x12   :  { %p497_p5 = scmp.ne.s32.totalorder %s39_s9, %s496_s10  ;;  %p502_p7 = scmp.lt.s32.totalorder %s496_s10, %s496_s10 }
  0x14   :  { %p503_p8 = por %p502_p7, %p501_p6 }
  0x16   :  { %p504_p9 = pnand %p503_p8, %p497_p5 }
  0x18   :  { %507 = shalt.err (!%p504_p9)
}
  0x19   :  { %44 = dma.hbm_to_vmem [thread:$0]  %s650_s3, 2048, %s39_s9, [#allocation6], %s557_s27, %s557_s27, %s558_s28  }
  0x1a   :  { %548 = dma.done.wait [#allocation3], 2048  }
  0x1b   :  { %549 = vsyncadd [#allocation3], 4294965248 }
  0x1c   :  { %550 = dma.done.wait [#allocation6], 2048  }
  0x1d   :  { %551 = vsyncadd [#allocation6], 4294965248  ;;  %v560_v0 = vmov 0.0   ;;  %v561_v1 = vmov 0   ;;  %vm562_vm0 = vmmov 0   ;;  %v212_v4 = vld [vmem:[#allocation5 + $0x78] sm:$0xff]  ;;  %v305_v52 = vlaneseq }
  0x1e   :  { %395 = vmatprep.subr.mxu1 %v560_v0  ;;  %187 = vmatprep.mubr.bf16.mxu0 %v561_v1  ;;  %v440_v2 = vld [vmem:[#allocation2 + $0x74] ss:$8 sps:$4 sm:$0xff]   ;;  %v442_v3 = vld [vmem:[#allocation2 + $0x70] ss:$8 sps:$4 sm:$0xff]   ;;  %v443_v6 = vld [vmem:[#allocation2 + $0x64] ss:$8 sps:$4 sm:$0xff]  }
  0x1f   :  { %427 = vmatprep.mubr.msk.f32.mxu1 %vm562_vm0, %v560_v0  ;;  %439 = vset.pattern.permute.xlu0 %v561_v1  ;;  %v211_v5 = vld [vmem:[#allocation5 + $0x70] sm:$0xff]  ;;  %v445_v7 = vld [vmem:[#allocation2 + $0x60] ss:$8 sps:$4 sm:$0xff]   ;;  %v208_v12 = vld [vmem:[#allocation5 + $0x58] sm:$0xff]  ;;  %v306_v54 = vand.u32 127, %v305_v52 }
  0x20   :  { %155 = vmatprep.subr.bf16.mxu0 %v440_v2  ;;  %396 = vmatpush3.msra.mxu1 %v212_v4  ;;  %v210_v8 = vld [vmem:[#allocation5 + $0x68] sm:$0xff]  ;;  %v446_v9 = vld [vmem:[#allocation2 + $0x54] ss:$8 sps:$4 sm:$0xff]   ;;  %v209_v10 = vld [vmem:[#allocation5 + $0x60] sm:$0xff] }
  0x21   :  { %156 = vmatpush1.bf16.msra.mxu0 %v442_v3  ;;  %397 = vmatprep.subr.mxu1 %v560_v0  ;;  %v448_v11 = vld [vmem:[#allocation2 + $0x50] ss:$8 sps:$4 sm:$0xff]   ;;  %v449_v13 = vld [vmem:[#allocation2 + $0x44] ss:$8 sps:$4 sm:$0xff]   ;;  %v451_v15 = vld [vmem:[#allocation2 + $0x40] ss:$8 sps:$4 sm:$0xff]  }
  0x22   :  { %398 = vmatpush3.msra.mxu1 %v211_v5  ;;  %157 = vmatprep.subr.bf16.mxu0 %v443_v6  ;;  %v207_v14 = vld [vmem:[#allocation5 + $0x50] sm:$0xff]  ;;  %v206_v16 = vld [vmem:[#allocation5 + $0x48] sm:$0xff]  ;;  %v205_v18 = vld [vmem:[#allocation5 + $0x40] sm:$0xff] }
  0x23   :  { %399 = vmatprep.subr.mxu1 %v560_v0  ;;  %v452_v17 = vld [vmem:[#allocation2 + $0x34] ss:$8 sps:$4 sm:$0xff]   ;;  %v454_v19 = vld [vmem:[#allocation2 + $0x30] ss:$8 sps:$4 sm:$0xff]   ;;  %v455_v21 = vld [vmem:[#allocation2 + $0x24] ss:$8 sps:$4 sm:$0xff]  }
  0x24   :  { %400 = vmatpush3.msra.mxu1 %v210_v8  ;;  %v204_v20 = vld [vmem:[#allocation5 + $0x38] sm:$0xff]  ;;  %v203_v22 = vld [vmem:[#allocation5 + $0x30] sm:$0xff]  ;;  %v457_v23 = vld [vmem:[#allocation2 + $0x20] ss:$8 sps:$4 sm:$0xff]  }
  0x25   :  { %158 = vmatpush1.bf16.msra.mxu0 %v445_v7  ;;  %401 = vmatprep.subr.mxu1 %v560_v0  ;;  %v202_v24 = vld [vmem:[#allocation5 + $0x28] sm:$0xff]  ;;  %v458_v25 = vld [vmem:[#allocation2 + $0x14] ss:$8 sps:$4 sm:$0xff]   ;;  %v201_v26 = vld [vmem:[#allocation5 + $0x20] sm:$0xff] }
  0x26   :  { %402 = vmatpush3.msra.mxu1 %v209_v10  ;;  %159 = vmatprep.subr.bf16.mxu0 %v446_v9  ;;  %v460_v27 = vld [vmem:[#allocation2 + $0x10] ss:$8 sps:$4 sm:$0xff]   ;;  %v461_v29 = vld [vmem:[#allocation2 + $0x4] ss:$8 sps:$4 sm:$0xff]   ;;  %v463_v32 = vld [vmem:[#allocation2] ss:$8 sps:$4 sm:$0xff]  }
  0x27   :  { %403 = vmatprep.subr.mxu1 %v560_v0  ;;  %v200_v28 = vld [vmem:[#allocation5 + $0x18] sm:$0xff]  ;;  %v199_v30 = vld [vmem:[#allocation5 + $0x10] sm:$0xff]  ;;  %v56_v31 = vld [vmem:[%s648_s1] sm:$0xff] }
  0x28   :  { %404 = vmatpush3.msra.mxu1 %v208_v12  ;;  %v198_v33 = vld [vmem:[#allocation5 + $0x8] sm:$0xff]  ;;  %v197_v34 = vld [vmem:[#allocation5] sm:$0xff]  ;;  %v196_v35 = vmul.f32 %v56_v31, %v56_v31  ;;  %v58_v36 = vpack.c.bf16 %v56_v31, %v56_v31 }
  0x29   :  { %160 = vmatpush1.bf16.msra.mxu0 %v448_v11  ;;  %405 = vmatprep.subr.mxu1 %v560_v0  ;;  %v375_v41 = vld [vmem:[%s651_s4] ss:$0 sm:$0xff] }
  0x2a   :  { %406 = vmatpush3.msra.mxu1 %v207_v14  ;;  %161 = vmatprep.subr.bf16.mxu0 %v449_v13  ;;  %v57_v48 = vld [vmem:[%s647_s0] sm:$0xff]  ;;  %s563_s0 = smov [#allocation7]  }
  0x2b   :  { %407 = vmatprep.subr.mxu1 %v560_v0  ;;  %v377_v53 = vld [vmem:[%s652_s5] ss:$0 sm:$0xff]  ;;  %s335_s17 = sshll.u32 %s563_s0, 4  ;;  %s336_s17 = int_to_ptr.vmem [resolvable:$true] %s335_s17 }
  0x2c   :  { %408 = vmatpush3.msra.mxu1 %v206_v16  ;;  %s508_s18 = scalar_lea.vmem %s336_s17, 128  ;;  %p513_p11 = scmp.lt.s32.totalorder %s336_s17, %s336_s17 }
  0x2d   :  { %162 = vmatpush1.bf16.msra.mxu0 %v451_v15  ;;  %409 = vmatprep.subr.mxu1 %v560_v0  ;;  %p509_p10 = scmp.ne.s32.totalorder %s336_s17, %s508_s18  ;;  %p514_p12 = scmp.lt.s32.totalorder %s508_s18, %s508_s18 }
  0x2e   :  { %410 = vmatpush3.msra.mxu1 %v205_v18  ;;  %163 = vmatprep.subr.bf16.mxu0 %v452_v17 }
  0x2f   :  { %411 = vmatprep.subr.mxu1 %v560_v0  ;;  %p515_p13 = por %p514_p12, %p513_p11 }
  0x30   :  { %412 = vmatpush3.msra.mxu1 %v204_v20 }
  0x31   :  { %164 = vmatpush1.bf16.msra.mxu0 %v454_v19  ;;  %413 = vmatprep.subr.mxu1 %v560_v0  ;;  %p516_p0 = pnand %p515_p13, %p509_p10 }
  0x32   :  { %414 = vmatpush3.msra.mxu1 %v203_v22  ;;  %165 = vmatprep.subr.bf16.mxu0 %v455_v21 }
  0x33   :  { %415 = vmatprep.subr.mxu1 %v560_v0 }
  0x34   :  { %416 = vmatpush3.msra.mxu1 %v202_v24 }
  0x35   :  { %166 = vmatpush1.bf16.msra.mxu0 %v457_v23  ;;  %417 = vmatprep.subr.mxu1 %v560_v0 }
  0x36   :  { %418 = vmatpush3.msra.mxu1 %v201_v26  ;;  %167 = vmatprep.subr.bf16.mxu0 %v458_v25 }
  0x37   :  { %419 = vmatprep.subr.mxu1 %v560_v0 }
  0x38   :  { %420 = vmatpush3.msra.mxu1 %v200_v28 }
  0x39   :  { %168 = vmatpush1.bf16.msra.mxu0 %v460_v27  ;;  %421 = vmatprep.subr.mxu1 %v560_v0 }
  0x3a   :  { %422 = vmatpush3.msra.mxu1 %v199_v30  ;;  %169 = vmatprep.subr.bf16.mxu0 %v461_v29 }
  0x3b   :  { %423 = vmatprep.subr.mxu1 %v560_v0 }
  0x3c   :  { %424 = vmatpush3.msra.mxu1 %v198_v33 }
  0x3d   :  { %170 = vmatpush1.bf16.msra.mxu0 %v463_v32  ;;  %425 = vmatprep.subr.mxu1 %v560_v0 }
  0x3e   :  { %426 = vmatpush3.msra.mxu1 %v197_v34 }
  0x3f   :  { %428 = vmatmul.mubr.f32.vlgmr.msra.gmra.mxu1 %v196_v35 }
  0x40   :  { %188 = vmatmul.mubr.bf16.vlgmr.msra.gmra.mxu0 %v58_v36 }
  0xff   :  { %v279_v37 = vpop.f32.mrf.mxu1 }
 0x100   :  { %v189_v38 = vpop.f32.mrf.mxu0 }
 0x101   :  { %v283_v39 = vmul.f32 2.0, %v189_v38  ;;  %v429_v40 = vpop.f32.mrf.mxu1 }
 0x102   :  { %v191_v42 = vpop.f32.mrf.mxu0 }
 0x103   :  { %v284_v43 = vsub.f32 %v279_v37, %v283_v39  ;;  %v320_v56 = vadd.f32 %v377_v53, %v191_v42 }
 0x104   :  { %v193_v44 = vpop.f32.mrf.mxu0 }
 0x105   :  { %v292_v45 = vadd.f32 %v375_v41, %v284_v43  ;;  %v321_v58 = vmul.f32 0.5, %v320_v56 }
 0x106   :  { %v194_v46 = vpop.f32.mrf.mxu0 }
 0x107   :  { %v293_v47 = vmul.f32 -0.5, %v292_v45 }
 0x109   :  { %294 = vst [vmem:[#allocation7] sm:$0xff] %v293_v47  ;;  %295 = vmax.xlane.f32.xlu0 %v293_v47  ;;  %v322_v57 = vmul.f32 1.1, %v293_v47 }
 0x10b   :  { %v323_v61 = vsub.f32 %v321_v58, %v322_v57 }
 0x11f   :  { %308 = vperm.xlu0 %439, %v57_v48  }
 0x192   :  { %v296_v49 = vpop.xlane.xlu0 %295 }
 0x193   :  { %v297_v50 = vsub.f32 %v293_v47, %v296_v49 }
 0x195   :  { %v298_v51 = vmul.f32 1.442695, %v297_v50 }
 0x197   :  { %464 = vpow2.f32 %v298_v51 }
 0x19a   :  { %v309_v55 = vpop.permute.xlu0 %308 }
 0x19b   :  { %vm310_vm1 = vcmp.eq.s32.totalorder %v306_v54, %v309_v55 }
 0x19c   :  { %v376_v60 = vsel %vm310_vm1, 1.0, %v560_v0 }
 0x19d   :  { %v324_v62 = vmul.f32 %v376_v60, %v323_v61 }
 0x1a4   :  { %v465_v59 = vpop.eup %464 }
 0x1a5   :  { %300 = vadd.xlane.f32.xlu1 %v465_v59 }
 0x1a9   :  { %325 = vadd.xlane.f32.xlu1 %v324_v62 }
 0x1aa   :  { %519 = shalt.err (!%p516_p0)
}
 0x1ab   :  { %338 = dma.vmem_to_hbm [thread:$0]  %s336_s17, 128, %s653_s6, [#allocation4]  }
 0x1ac   :  { %s564_s20 = smov [#allocation8]  }
 0x1ad   :  { %s345_s21 = sshll.u32 %s564_s20, 4  ;;  %s346_s21 = int_to_ptr.vmem [resolvable:$true] %s345_s21 }
 0x1ae   :  { %s528_s22 = scalar_lea.vmem %s346_s21, 128  ;;  %p533_p2 = scmp.lt.s32.totalorder %s346_s21, %s346_s21 }
 0x1af   :  { %p529_p1 = scmp.ne.s32.totalorder %s346_s21, %s528_s22  ;;  %p534_p3 = scmp.lt.s32.totalorder %s528_s22, %s528_s22 }
 0x1b1   :  { %p535_p4 = por %p534_p3, %p533_p2 }
 0x1b3   :  { %p536_p5 = pnand %p535_p4, %p529_p1 }
 0x22e   :  { %v301_v63 = vpop.xlane.xlu1 %300 }
 0x22f   :  { %466 = vlog2.f32 %v301_v63 }
 0x232   :  { %v326_v3 = vpop.xlane.xlu1 %325 }
 0x23c   :  { %v467_v0 = vpop.eup %466 }
 0x23d   :  { %v303_v1 = vmul.f32 0.6931472, %v467_v0 }
 0x23f   :  { %v304_v2 = vadd.f32 %v303_v1, %v296_v49 }
 0x241   :  { %v327_v4 = vadd.f32 %v326_v3, %v304_v2 }
 0x243   :  { %328 = vst [vmem:[#allocation8] sm:$0xff] %v327_v4 }
 0x244   :  { %539 = shalt.err (!%p536_p5)
}
 0x245   :  { %348 = dma.vmem_to_hbm [thread:$0]  %s346_s21, 128, %s654_s7, [#allocation9]  }
 0x246   :  { %552 = dma.done.wait [#allocation4], 128  }
 0x247   :  { %553 = vsyncadd [#allocation4], 4294967168 }
 0x248   :  { %554 = dma.done.wait [#allocation9], 128  }
 0x249   :  { %555 = vsyncadd [#allocation9], 4294967168 }
 0x24a   :  { %355 = vsyncpa [#allocation3], 1 }
 0x24b   :  { %356 = vsyncpa [#allocation6], 1 }
 0x24c   :  { %357 = vsyncpa [#allocation4], 1 }
 0x24d   :  { %358 = vsyncpa [#allocation9], 1 }

// kernel: tpu_custom_call.1
= control target key start
LH: loop header
LB: loop body
LE: loop exit
PB: predicated region body
PF: predicated region fallthrough
CT: control target
= control target key end

     0   :  { %13 = vsyncpa [#allocation3], 0  ;;  %s647_s0 = inlined_call_operand.vmem [shape: s32[8,1], index: 0, kind: input, shape index: {}]   ;;  %s648_s1 = inlined_call_operand.vmem [shape: f32[8,128], index: 1, kind: input, shape index: {}]   ;;  %s649_s2 = inlined_call_operand.hbm [shape: bf16[128,256], index: 2, kind: input, shape index: {}]   ;;  %s650_s3 = inlined_call_operand.hbm [shape: f32[128,128], index: 3, kind: input, shape index: {}]   ;;  %s651_s4 = inlined_call_operand.vmem [shape: f32[1,128], index: 4, kind: input, shape index: {}]   ;;  %s652_s5 = inlined_call_operand.vmem [shape: f32[1,128], index: 5, kind: input, shape index: {}]   ;;  %s653_s6 = inlined_call_operand.hbm [shape: f32[8,128], index: 6, kind: output, shape index: {0}]   ;;  %s654_s7 = inlined_call_operand.hbm [shape: f32[8,128], index: 7, kind: output, shape index: {1}]  }
   0x1   :  { %14 = vsyncpa [#allocation6], 0 }
   0x2   :  { %15 = vsyncpa [#allocation4], 0 }
   0x3   :  { %16 = vsyncpa [#allocation9], 0  ;;  %s556_s24 = smov [#allocation2]  }
   0x4   :  { %s26_s25 = sshll.u32 %s556_s24, 4  ;;  %s27_s25 = int_to_ptr.vmem [resolvable:$true] %s26_s25 }
   0x5   :  { %s476_s26 = scalar_lea.vmem %s27_s25, 2048  ;;  %p481_p1 = scmp.lt.s32.totalorder %s27_s25, %s27_s25 }
   0x6   :  { %p477_p0 = scmp.ne.s32.totalorder %s27_s25, %s476_s26  ;;  %p482_p2 = scmp.lt.s32.totalorder %s476_s26, %s476_s26 }
   0x8   :  { %p483_p3 = por %p482_p2, %p481_p1 }
   0xa   :  { %p484_p4 = pnand %p483_p3, %p477_p0 }
   0xc   :  { %487 = shalt.err (!%p484_p4)
}
   0xd   :  { %s557_s27 = smov 128   ;;  %s558_s28 = smov 8  }
   0xe   :  { %32 = dma.hbm_to_vmem [thread:$0]  %s649_s2, 2048, %s27_s25, [#allocation3], %s557_s27, %s557_s27, %s558_s28  }
   0xf   :  { %s559_s8 = smov [#allocation5]  }
  0x10   :  { %s38_s9 = sshll.u32 %s559_s8, 4  ;;  %s39_s9 = int_to_ptr.vmem [resolvable:$true] %s38_s9 }
  0x11   :  { %s496_s10 = scalar_lea.vmem %s39_s9, 2048  ;;  %p501_p6 = scmp.lt.s32.totalorder %s39_s9, %s39_s9 }
  0x12   :  { %p497_p5 = scmp.ne.s32.totalorder %s39_s9, %s496_s10  ;;  %p502_p7 = scmp.lt.s32.totalorder %s496_s10, %s496_s10 }
  0x14   :  { %p503_p8 = por %p502_p7, %p501_p6 }
  0x16   :  { %p504_p9 = pnand %p503_p8, %p497_p5 }
  0x18   :  { %507 = shalt.err (!%p504_p9)
}
  0x19   :  { %44 = dma.hbm_to_vmem [thread:$0]  %s650_s3, 2048, %s39_s9, [#allocation6], %s557_s27, %s557_s27, %s558_s28  }
  0x1a   :  { %548 = dma.done.wait [#allocation3], 2048  }
  0x1b   :  { %549 = vsyncadd [#allocation3], 4294965248 }
  0x1c   :  { %550 = dma.done.wait [#allocation6], 2048  }
  0x1d   :  { %551 = vsyncadd [#allocation6], 4294965248  ;;  %v560_v0 = vmov 0.0   ;;  %v561_v1 = vmov 0   ;;  %vm562_vm0 = vmmov 0   ;;  %v212_v4 = vld [vmem:[#allocation5 + $0x78] sm:$0xff]  ;;  %v305_v52 = vlaneseq }
  0x1e   :  { %395 = vmatprep.subr.mxu1 %v560_v0  ;;  %187 = vmatprep.mubr.bf16.mxu0 %v561_v1  ;;  %v440_v2 = vld [vmem:[#allocation2 + $0x74] ss:$8 sps:$4 sm:$0xff]   ;;  %v442_v3 = vld [vmem:[#allocation2 + $0x70] ss:$8 sps:$4 sm:$0xff]   ;;  %v443_v6 = vld [vmem:[#allocation2 + $0x64] ss:$8 sps:$4 sm:$0xff]  }
  0x1f   :  { %427 = vmatprep.mubr.msk.f32.mxu1 %vm562_vm0, %v560_v0  ;;  %439 = vset.pattern.permute.xlu0 %v561_v1  ;;  %v211_v5 = vld [vmem:[#allocation5 + $0x70] sm:$0xff]  ;;  %v445_v7 = vld [vmem:[#allocation2 + $0x60] ss:$8 sps:$4 sm:$0xff]   ;;  %v208_v12 = vld [vmem:[#allocation5 + $0x58] sm:$0xff]  ;;  %v306_v54 = vand.u32 127, %v305_v52 }
  0x20   :  { %155 = vmatprep.subr.bf16.mxu0 %v440_v2  ;;  %396 = vmatpush3.msra.mxu1 %v212_v4  ;;  %v210_v8 = vld [vmem:[#allocation5 + $0x68] sm:$0xff]  ;;  %v446_v9 = vld [vmem:[#allocation2 + $0x54] ss:$8 sps:$4 sm:$0xff]   ;;  %v209_v10 = vld [vmem:[#allocation5 + $0x60] sm:$0xff] }
  0x21   :  { %156 = vmatpush1.bf16.msra.mxu0 %v442_v3  ;;  %397 = vmatprep.subr.mxu1 %v560_v0  ;;  %v448_v11 = vld [vmem:[#allocation2 + $0x50] ss:$8 sps:$4 sm:$0xff]   ;;  %v449_v13 = vld [vmem:[#allocation2 + $0x44] ss:$8 sps:$4 sm:$0xff]   ;;  %v451_v15 = vld [vmem:[#allocation2 + $0x40] ss:$8 sps:$4 sm:$0xff]  }
  0x22   :  { %398 = vmatpush3.msra.mxu1 %v211_v5  ;;  %157 = vmatprep.subr.bf16.mxu0 %v443_v6  ;;  %v207_v14 = vld [vmem:[#allocation5 + $0x50] sm:$0xff]  ;;  %v206_v16 = vld [vmem:[#allocation5 + $0x48] sm:$0xff]  ;;  %v205_v18 = vld [vmem:[#allocation5 + $0x40] sm:$0xff] }
  0x23   :  { %399 = vmatprep.subr.mxu1 %v560_v0  ;;  %v452_v17 = vld [vmem:[#allocation2 + $0x34] ss:$8 sps:$4 sm:$0xff]   ;;  %v454_v19 = vld [vmem:[#allocation2 + $0x30] ss:$8 sps:$4 sm:$0xff]   ;;  %v455_v21 = vld [vmem:[#allocation2 + $0x24] ss:$8 sps:$4 sm:$0xff]  }
  0x24   :  { %400 = vmatpush3.msra.mxu1 %v210_v8  ;;  %v204_v20 = vld [vmem:[#allocation5 + $0x38] sm:$0xff]  ;;  %v203_v22 = vld [vmem:[#allocation5 + $0x30] sm:$0xff]  ;;  %v457_v23 = vld [vmem:[#allocation2 + $0x20] ss:$8 sps:$4 sm:$0xff]  }
  0x25   :  { %158 = vmatpush1.bf16.msra.mxu0 %v445_v7  ;;  %401 = vmatprep.subr.mxu1 %v560_v0  ;;  %v202_v24 = vld [vmem:[#allocation5 + $0x28] sm:$0xff]  ;;  %v458_v25 = vld [vmem:[#allocation2 + $0x14] ss:$8 sps:$4 sm:$0xff]   ;;  %v201_v26 = vld [vmem:[#allocation5 + $0x20] sm:$0xff] }
  0x26   :  { %402 = vmatpush3.msra.mxu1 %v209_v10  ;;  %159 = vmatprep.subr.bf16.mxu0 %v446_v9  ;;  %v460_v27 = vld [vmem:[#allocation2 + $0x10] ss:$8 sps:$4 sm:$0xff]   ;;  %v461_v29 = vld [vmem:[#allocation2 + $0x4] ss:$8 sps:$4 sm:$0xff]   ;;  %v463_v32 = vld [vmem:[#allocation2] ss:$8 sps:$4 sm:$0xff]  }
  0x27   :  { %403 = vmatprep.subr.mxu1 %v560_v0  ;;  %v200_v28 = vld [vmem:[#allocation5 + $0x18] sm:$0xff]  ;;  %v199_v30 = vld [vmem:[#allocation5 + $0x10] sm:$0xff]  ;;  %v56_v31 = vld [vmem:[%s648_s1] sm:$0xff] }
  0x28   :  { %404 = vmatpush3.msra.mxu1 %v208_v12  ;;  %v198_v33 = vld [vmem:[#allocation5 + $0x8] sm:$0xff]  ;;  %v197_v34 = vld [vmem:[#allocation5] sm:$0xff]  ;;  %v196_v35 = vmul.f32 %v56_v31, %v56_v31  ;;  %v58_v36 = vpack.c.bf16 %v56_v31, %v56_v31 }
  0x29   :  { %160 = vmatpush1.bf16.msra.mxu0 %v448_v11  ;;  %405 = vmatprep.subr.mxu1 %v560_v0  ;;  %v375_v41 = vld [vmem:[%s651_s4] ss:$0 sm:$0xff] }
  0x2a   :  { %406 = vmatpush3.msra.mxu1 %v207_v14  ;;  %161 = vmatprep.subr.bf16.mxu0 %v449_v13  ;;  %v57_v48 = vld [vmem:[%s647_s0] sm:$0xff]  ;;  %s563_s0 = smov [#allocation7]  }
  0x2b   :  { %407 = vmatprep.subr.mxu1 %v560_v0  ;;  %v377_v53 = vld [vmem:[%s652_s5] ss:$0 sm:$0xff]  ;;  %s335_s17 = sshll.u32 %s563_s0, 4  ;;  %s336_s17 = int_to_ptr.vmem [resolvable:$true] %s335_s17 }
  0x2c   :  { %408 = vmatpush3.msra.mxu1 %v206_v16  ;;  %s508_s18 = scalar_lea.vmem %s336_s17, 128  ;;  %p513_p11 = scmp.lt.s32.totalorder %s336_s17, %s336_s17 }
  0x2d   :  { %162 = vmatpush1.bf16.msra.mxu0 %v451_v15  ;;  %409 = vmatprep.subr.mxu1 %v560_v0  ;;  %p509_p10 = scmp.ne.s32.totalorder %s336_s17, %s508_s18  ;;  %p514_p12 = scmp.lt.s32.totalorder %s508_s18, %s508_s18 }
  0x2e   :  { %410 = vmatpush3.msra.mxu1 %v205_v18  ;;  %163 = vmatprep.subr.bf16.mxu0 %v452_v17 }
  0x2f   :  { %411 = vmatprep.subr.mxu1 %v560_v0  ;;  %p515_p13 = por %p514_p12, %p513_p11 }
  0x30   :  { %412 = vmatpush3.msra.mxu1 %v204_v20 }
  0x31   :  { %164 = vmatpush1.bf16.msra.mxu0 %v454_v19  ;;  %413 = vmatprep.subr.mxu1 %v560_v0  ;;  %p516_p0 = pnand %p515_p13, %p509_p10 }
  0x32   :  { %414 = vmatpush3.msra.mxu1 %v203_v22  ;;  %165 = vmatprep.subr.bf16.mxu0 %v455_v21 }
  0x33   :  { %415 = vmatprep.subr.mxu1 %v560_v0 }
  0x34   :  { %416 = vmatpush3.msra.mxu1 %v202_v24 }
  0x35   :  { %166 = vmatpush1.bf16.msra.mxu0 %v457_v23  ;;  %417 = vmatprep.subr.mxu1 %v560_v0 }
  0x36   :  { %418 = vmatpush3.msra.mxu1 %v201_v26  ;;  %167 = vmatprep.subr.bf16.mxu0 %v458_v25 }
  0x37   :  { %419 = vmatprep.subr.mxu1 %v560_v0 }
  0x38   :  { %420 = vmatpush3.msra.mxu1 %v200_v28 }
  0x39   :  { %168 = vmatpush1.bf16.msra.mxu0 %v460_v27  ;;  %421 = vmatprep.subr.mxu1 %v560_v0 }
  0x3a   :  { %422 = vmatpush3.msra.mxu1 %v199_v30  ;;  %169 = vmatprep.subr.bf16.mxu0 %v461_v29 }
  0x3b   :  { %423 = vmatprep.subr.mxu1 %v560_v0 }
  0x3c   :  { %424 = vmatpush3.msra.mxu1 %v198_v33 }
  0x3d   :  { %170 = vmatpush1.bf16.msra.mxu0 %v463_v32  ;;  %425 = vmatprep.subr.mxu1 %v560_v0 }
  0x3e   :  { %426 = vmatpush3.msra.mxu1 %v197_v34 }
  0x3f   :  { %428 = vmatmul.mubr.f32.vlgmr.msra.gmra.mxu1 %v196_v35 }
  0x40   :  { %188 = vmatmul.mubr.bf16.vlgmr.msra.gmra.mxu0 %v58_v36 }
  0xff   :  { %v279_v37 = vpop.f32.mrf.mxu1 }
 0x100   :  { %v189_v38 = vpop.f32.mrf.mxu0 }
 0x101   :  { %v283_v39 = vmul.f32 2.0, %v189_v38  ;;  %v429_v40 = vpop.f32.mrf.mxu1 }
 0x102   :  { %v191_v42 = vpop.f32.mrf.mxu0 }
 0x103   :  { %v284_v43 = vsub.f32 %v279_v37, %v283_v39  ;;  %v320_v56 = vadd.f32 %v377_v53, %v191_v42 }
 0x104   :  { %v193_v44 = vpop.f32.mrf.mxu0 }
 0x105   :  { %v292_v45 = vadd.f32 %v375_v41, %v284_v43  ;;  %v321_v58 = vmul.f32 0.5, %v320_v56 }
 0x106   :  { %v194_v46 = vpop.f32.mrf.mxu0 }
 0x107   :  { %v293_v47 = vmul.f32 -0.5, %v292_v45 }
 0x109   :  { %294 = vst [vmem:[#allocation7] sm:$0xff] %v293_v47  ;;  %295 = vmax.xlane.f32.xlu0 %v293_v47  ;;  %v322_v57 = vmul.f32 1.1, %v293_v47 }
 0x10b   :  { %v323_v61 = vsub.f32 %v321_v58, %v322_v57 }
 0x11f   :  { %308 = vperm.xlu0 %439, %v57_v48  }
 0x192   :  { %v296_v49 = vpop.xlane.xlu0 %295 }
 0x193   :  { %v297_v50 = vsub.f32 %v293_v47, %v296_v49 }
 0x195   :  { %v298_v51 = vmul.f32 1.442695, %v297_v50 }
 0x197   :  { %464 = vpow2.f32 %v298_v51 }
 0x19a   :  { %v309_v55 = vpop.permute.xlu0 %308 }
 0x19b   :  { %vm310_vm1 = vcmp.eq.s32.totalorder %v306_v54, %v309_v55 }
 0x19c   :  { %v376_v60 = vsel %vm310_vm1, 1.0, %v560_v0 }
 0x19d   :  { %v324_v62 = vmul.f32 %v376_v60, %v323_v61 }
 0x1a4   :  { %v465_v59 = vpop.eup %464 }
 0x1a5   :  { %300 = vadd.xlane.f32.xlu1 %v465_v59 }
 0x1a9   :  { %325 = vadd.xlane.f32.xlu1 %v324_v62 }
 0x1aa   :  { %519 = shalt.err (!%p516_p0)
}
 0x1ab   :  { %338 = dma.vmem_to_hbm [thread:$0]  %s336_s17, 128, %s653_s6, [#allocation4]  }
 0x1ac   :  { %s564_s20 = smov [#allocation8]  }
 0x1ad   :  { %s345_s21 = sshll.u32 %s564_s20, 4  ;;  %s346_s21 = int_to_ptr.vmem [resolvable:$true] %s345_s21 }
 0x1ae   :  { %s528_s22 = scalar_lea.vmem %s346_s21, 128  ;;  %p533_p2 = scmp.lt.s32.totalorder %s346_s21, %s346_s21 }
 0x1af   :  { %p529_p1 = scmp.ne.s32.totalorder %s346_s21, %s528_s22  ;;  %p534_p3 = scmp.lt.s32.totalorder %s528_s22, %s528_s22 }
 0x1b1   :  { %p535_p4 = por %p534_p3, %p533_p2 }
 0x1b3   :  { %p536_p5 = pnand %p535_p4, %p529_p1 }
 0x22e   :  { %v301_v63 = vpop.xlane.xlu1 %300 }
 0x22f   :  { %466 = vlog2.f32 %v301_v63 }
 0x232   :  { %v326_v3 = vpop.xlane.xlu1 %325 }
 0x23c   :  { %v467_v0 = vpop.eup %466 }
 0x23d   :  { %v303_v1 = vmul.f32 0.6931472, %v467_v0 }
 0x23f   :  { %v304_v2 = vadd.f32 %v303_v1, %v296_v49 }
 0x241   :  { %v327_v4 = vadd.f32 %v326_v3, %v304_v2 }
 0x243   :  { %328 = vst [vmem:[#allocation8] sm:$0xff] %v327_v4 }
 0x244   :  { %539 = shalt.err (!%p536_p5)
}
 0x245   :  { %348 = dma.vmem_to_hbm [thread:$0]  %s346_s21, 128, %s654_s7, [#allocation9]  }
 0x246   :  { %552 = dma.done.wait [#allocation4], 128  }
 0x247   :  { %553 = vsyncadd [#allocation4], 4294967168 }
 0x248   :  { %554 = dma.done.wait [#allocation9], 128  }
 0x249   :  { %555 = vsyncadd [#allocation9], 4294967168 }
 0x24a   :  { %355 = vsyncpa [#allocation3], 1 }
 0x24b   :  { %356 = vsyncpa [#allocation6], 1 }
 0x24c   :  { %357 = vsyncpa [#allocation4], 1 }
 0x24d   :  { %358 = vsyncpa [#allocation9], 1 }

</bundles_post_ra>
